<compile_context>
chip_gen: v5e
topology: v5e:2x2
jax: 0.10.0
libtpu: 0.0.40
codegen_flags: <defaults>
</compile_context>

<pallas_src>
import math

import jax
import jax.numpy as jnp
from jax.experimental import pallas as pl
from jax.experimental.pallas import tpu as pltpu

LN_EPS = 1e-12


def _gelu_erf(x):
    # torch F.gelu default / tnlrv3 ACT2FN["gelu"]: x * 0.5 * (1 + erf(x / sqrt(2)))
    return 0.5 * x * (1.0 + jax.lax.erf(x * (1.0 / math.sqrt(2.0))))


def mlm_head_kernel(x_ref, wd_ref, bd_ref, g_ref, b_ref,   # hidden tile + transform params
                    dec_ref, dbias_ref,                    # decoder weight/bias tile
                    out_ref,                               # (tm, tv) logits tile
                    t_ref):                                # bf16 VMEM scratch (tm, H)
    # Transform (dense + GELU + LayerNorm): compute once per token tile (vocab
    # step 0), keep in bf16 scratch and reuse while the vocab table streams.
    @pl.when(pl.program_id(1) == 0)
    def _():
        # x (tm,H) contracted with dense_w (H_out,H_in) on the last dim of both
        # == x @ W.T (F.linear), bf16 operands -> f32 accumulation on the MXU.
        h = jax.lax.dot_general(
            x_ref[...], wd_ref[...],
            dimension_numbers=(((1,), (1,)), ((), ())),
            preferred_element_type=jnp.float32) + bd_ref[...]
        h = _gelu_erf(h)
        mu = jnp.mean(h, axis=-1, keepdims=True)
        var = jnp.mean(jnp.square(h - mu), axis=-1, keepdims=True)
        y = (h - mu) * (jax.lax.rsqrt(var + LN_EPS) * g_ref[...]) + b_ref[...]
        t_ref[...] = y.astype(t_ref.dtype)

    # Decoder matmul for this vocab tile: (tm,H) x (tv,H) contracted on H
    # (== t @ decoder_weight.T), lane-dense unmasked output store.
    acc = jax.lax.dot_general(
        t_ref[...], dec_ref[...],
        dimension_numbers=(((1,), (1,)), ((), ())),
        preferred_element_type=jnp.float32)
    out_ref[...] = (acc + dbias_ref[...]).astype(out_ref.dtype)


def bert_mlm_head(sequence_output, dense_w, dense_b, ln_gamma, ln_beta,
                  decoder_weight, decoder_bias, *, tm=512, tv=512,
                  out_dtype=jnp.float32):
    """BertOnlyMLMHead forward. Returns (B, S, V) prediction scores."""
    B, S, H = sequence_output.shape
    V, Hd = decoder_weight.shape
    assert Hd == H and dense_w.shape == (H, H)
    assert H % 128 == 0, "hidden size must be lane-aligned"
    assert tv % 128 == 0 and tm % 8 == 0

    M = B * S
    x = sequence_output.reshape(M, H)
    if x.dtype != jnp.bfloat16:
        x = x.astype(jnp.bfloat16)

    # Token tile: multiple of 8 sublanes, no bigger than the (padded) slab.
    tm = min(tm, max(8, -(-M // 8) * 8))
    Mp = -(-M // tm) * tm
    if Mp != M:
        # TODO(synk): a ragged last token tile would avoid this (M,H) pad copy;
        # only taken when M is not a multiple of tm.
        x = jnp.pad(x, ((0, Mp - M), (0, 0)))

    # Pad the vocab axis to a tile multiple so every output store is a full,
    # unmasked 128-lane vst (handles the real 30522 vocab); sliced back below.
    Vp = -(-V // tv) * tv
    dec_w = decoder_weight if decoder_weight.dtype == jnp.bfloat16 \
        else decoder_weight.astype(jnp.bfloat16)
    db = decoder_bias.astype(jnp.float32)
    if Vp != V:
        dec_w = jnp.pad(dec_w, ((0, Vp - V), (0, 0)))
        db = jnp.pad(db, ((0, Vp - V),))

    wd = dense_w if dense_w.dtype == jnp.bfloat16 else dense_w.astype(jnp.bfloat16)
    bd = dense_b.astype(jnp.float32).reshape(1, H)
    g = ln_gamma.astype(jnp.float32).reshape(1, H)
    bta = ln_beta.astype(jnp.float32).reshape(1, H)
    db = db.reshape(1, Vp)

    grid = (Mp // tm, Vp // tv)

    # VMEM budget: double-buffered x / decoder-weight / output tiles,
    # single-buffered constants, plus the bf16 transform scratch.
    out_bytes = jnp.dtype(out_dtype).itemsize
    vmem_est = (2 * tm * H * 2          # x tiles (bf16, double-buffered)
                + H * H * 2             # dense weight (bf16, single-buffered)
                + 8 * H * 4             # small per-feature params (generous)
                + 2 * tv * H * 2        # decoder weight tiles (bf16, streamed)
                + 2 * tv * 4            # decoder bias tiles
                + 2 * tm * tv * out_bytes  # output tiles
                + tm * H * 2)           # transform scratch (bf16)
    vmem_limit = max(32 * 1024 * 1024, 2 * vmem_est)

    const = pl.Buffered(1)  # grid-constant operands: no second VMEM buffer
    logits = pl.pallas_call(
        mlm_head_kernel,
        out_shape=jax.ShapeDtypeStruct((Mp, Vp), out_dtype),
        grid_spec=pltpu.PrefetchScalarGridSpec(
            num_scalar_prefetch=0,
            grid=grid,
            in_specs=[
                pl.BlockSpec((tm, H), lambda i, j: (i, 0)),     # hidden tile (bf16)
                pl.BlockSpec((H, H), lambda i, j: (0, 0), pipeline_mode=const),   # dense W (untransposed)
                pl.BlockSpec((1, H), lambda i, j: (0, 0), pipeline_mode=const),   # dense bias
                pl.BlockSpec((1, H), lambda i, j: (0, 0), pipeline_mode=const),   # LN gamma
                pl.BlockSpec((1, H), lambda i, j: (0, 0), pipeline_mode=const),   # LN beta
                pl.BlockSpec((tv, H), lambda i, j: (j, 0)),     # decoder W tile (streamed, untransposed)
                pl.BlockSpec((1, tv), lambda i, j: (0, j)),     # decoder bias tile
            ],
            out_specs=pl.BlockSpec((tm, tv), lambda i, j: (i, j)),
            scratch_shapes=[pltpu.VMEM((tm, H), jnp.bfloat16)],
        ),
        compiler_params=pltpu.CompilerParams(
            dimension_semantics=("parallel", "arbitrary"),
            vmem_limit_bytes=int(vmem_limit)),
    )(x, wd, bd, g, bta, dec_w, db)

    return logits[:M, :V].reshape(B, S, V)


def _reference(sequence_output, dense_w, dense_b, g, b, dec_w, dec_b):
    h = jnp.einsum("bsh,kh->bsk", sequence_output, dense_w,
                   precision=jax.lax.Precision.HIGHEST) + dense_b
    h = _gelu_erf(h)
    mu = jnp.mean(h, axis=-1, keepdims=True)
    var = jnp.mean(jnp.square(h - mu), axis=-1, keepdims=True)
    h = (h - mu) * jax.lax.rsqrt(var + LN_EPS) * g + b
    return jnp.einsum("bsh,vh->bsv", h, dec_w,
                      precision=jax.lax.Precision.HIGHEST) + dec_b


if __name__ == "__main__":
    # Small shapes: vocab (640) is deliberately not a multiple of tv (512) so the
    # streaming + vocab-padding path is exercised.
    B, S, H, V = 2, 8, 128, 640
    key = jax.random.PRNGKey(0)
    k1, k2, k3, k4, k5 = jax.random.split(key, 5)

    # Deterministic synthetic parameters (shapes from module __init__).
    sequence_output = jax.random.normal(k1, (B, S, H), dtype=jnp.float32)
    dense_w = jax.random.normal(k2, (H, H), dtype=jnp.float32) * 0.02
    dense_b = jax.random.normal(k3, (H,), dtype=jnp.float32) * 0.02
    ln_gamma = jnp.ones((H,), dtype=jnp.float32)
    ln_beta = jnp.zeros((H,), dtype=jnp.float32)
    decoder_weight = jax.random.normal(k4, (V, H), dtype=jnp.float32) * 0.02
    decoder_bias = jax.random.normal(k5, (V,), dtype=jnp.float32) * 0.02

    logits = bert_mlm_head(sequence_output, dense_w, dense_b, ln_gamma, ln_beta,
                           decoder_weight, decoder_bias)
    logits = jax.block_until_ready(logits)

    ref = _reference(sequence_output, dense_w, dense_b, ln_gamma, ln_beta,
                     decoder_weight, decoder_bias)
    assert logits.shape == (B, S, V)
    max_err = float(jnp.max(jnp.abs(logits - ref)))
    # bf16 matmuls (f32 accumulation) -> looser tolerance than the all-f32 path.
    assert jnp.allclose(logits, ref, atol=2e-2, rtol=2e-2), f"mismatch vs reference: {max_err}"
    print("KERNEL_OK")
</pallas_src>

<mosaic_0001>
module attributes {stable_mosaic.version = 11 : i64} {
  func.func @mlm_head_kernel(%arg0: i32, %arg1: i32, %arg2: memref<16x128xbf16, #tpu.memory_space<vmem>>, %arg3: memref<128x128xbf16, #tpu.memory_space<vmem>>, %arg4: memref<1x128xf32, #tpu.memory_space<vmem>>, %arg5: memref<1x128xf32, #tpu.memory_space<vmem>>, %arg6: memref<1x128xf32, #tpu.memory_space<vmem>>, %arg7: memref<512x128xbf16, #tpu.memory_space<vmem>>, %arg8: memref<1x512xf32, #tpu.memory_space<vmem>>, %arg9: memref<16x512xf32, #tpu.memory_space<vmem>>, %arg10: memref<16x128xbf16, #tpu.memory_space<vmem>>) attributes {dimension_semantics = [#tpu.dimension_semantics<parallel>, #tpu.dimension_semantics<arbitrary>], iteration_bounds = array<i64: 1, 2>, scalar_prefetch = 0 : i64, scratch_operands = 1 : i64, tpu.core_type = #tpu.core_type<tc>, window_params = [{transform_indices = @transform_0, window_bounds = array<i64: 16, 128>}, {pipeline_mode = #tpu.pipeline_mode<synchronous>, transform_indices = @transform_1, window_bounds = array<i64: 128, 128>}, {pipeline_mode = #tpu.pipeline_mode<synchronous>, transform_indices = @transform_2, window_bounds = array<i64: 1, 128>}, {pipeline_mode = #tpu.pipeline_mode<synchronous>, transform_indices = @transform_3, window_bounds = array<i64: 1, 128>}, {pipeline_mode = #tpu.pipeline_mode<synchronous>, transform_indices = @transform_4, window_bounds = array<i64: 1, 128>}, {transform_indices = @transform_5, window_bounds = array<i64: 512, 128>}, {transform_indices = @transform_6, window_bounds = array<i64: 1, 512>}, {transform_indices = @transform_7, window_bounds = array<i64: 16, 512>}]} {
    %c0_i32 = arith.constant 0 : i32
    %0 = arith.cmpi eq, %arg1, %c0_i32 : i32
    %1 = arith.extui %0 : i1 to i32
    %c0_i32_0 = arith.constant 0 : i32
    %2 = arith.cmpi ne, %1, %c0_i32_0 : i32
    scf.if %2 {
      %c0_8 = arith.constant 0 : index
      %c0_9 = arith.constant 0 : index
      %10 = vector.load %arg2[%c0_8, %c0_9] : memref<16x128xbf16, #tpu.memory_space<vmem>>, vector<16x128xbf16>
      %c0_10 = arith.constant 0 : index
      %c0_11 = arith.constant 0 : index
      %11 = vector.load %arg3[%c0_10, %c0_11] : memref<128x128xbf16, #tpu.memory_space<vmem>>, vector<128x128xbf16>
      %cst_12 = arith.constant dense<0.000000e+00> : vector<16x128xf32>
      %12 = tpu.matmul %10, %11, %cst_12 {dimension_numbers = #tpu.dot_dimension_numbers<[1], [1], [0], [0], [0, 0, 1, 0], [], []>} : vector<16x128xbf16>, vector<128x128xbf16>, vector<16x128xf32> -> vector<16x128xf32>
      %c0_13 = arith.constant 0 : index
      %c0_14 = arith.constant 0 : index
      %13 = vector.load %arg4[%c0_13, %c0_14] : memref<1x128xf32, #tpu.memory_space<vmem>>, vector<1x128xf32>
      %14 = vector.broadcast %13 : vector<1x128xf32> to vector<16x128xf32>
      %15 = arith.addf %12, %14 : vector<16x128xf32>
      %cst_15 = arith.constant 5.000000e-01 : f32
      %16 = vector.broadcast %cst_15 : f32 to vector<16x128xf32>
      %17 = arith.mulf %16, %15 : vector<16x128xf32>
      %cst_16 = arith.constant 0.707106769 : f32
      %18 = vector.broadcast %cst_16 : f32 to vector<16x128xf32>
      %19 = arith.mulf %15, %18 : vector<16x128xf32>
      %20 = math.erf %19 : vector<16x128xf32>
      %cst_17 = arith.constant 1.000000e+00 : f32
      %21 = vector.broadcast %cst_17 : f32 to vector<16x128xf32>
      %22 = arith.addf %21, %20 : vector<16x128xf32>
      %23 = arith.mulf %17, %22 : vector<16x128xf32>
      %cst_18 = arith.constant dense<0.000000e+00> : vector<16xf32>
      %24 = vector.multi_reduction <add>, %23, %cst_18 [1] : vector<16x128xf32> to vector<16xf32>
      %25 = vector.shape_cast %24 : vector<16xf32> to vector<16x1xf32>
      %cst_19 = arith.constant 1.280000e+02 : f32
      %26 = vector.broadcast %cst_19 : f32 to vector<16x1xf32>
      %27 = arith.divf %25, %26 : vector<16x1xf32>
      %28 = vector.broadcast %27 : vector<16x1xf32> to vector<16x128xf32>
      %29 = arith.subf %23, %28 : vector<16x128xf32>
      %30 = arith.mulf %29, %29 : vector<16x128xf32>
      %cst_20 = arith.constant dense<0.000000e+00> : vector<16xf32>
      %31 = vector.multi_reduction <add>, %30, %cst_20 [1] : vector<16x128xf32> to vector<16xf32>
      %32 = vector.shape_cast %31 : vector<16xf32> to vector<16x1xf32>
      %cst_21 = arith.constant 1.280000e+02 : f32
      %33 = vector.broadcast %cst_21 : f32 to vector<16x1xf32>
      %34 = arith.divf %32, %33 : vector<16x1xf32>
      %35 = vector.broadcast %27 : vector<16x1xf32> to vector<16x128xf32>
      %36 = arith.subf %23, %35 : vector<16x128xf32>
      %cst_22 = arith.constant 9.99999996E-13 : f32
      %37 = vector.broadcast %cst_22 : f32 to vector<16x1xf32>
      %38 = arith.addf %34, %37 : vector<16x1xf32>
      %39 = math.rsqrt %38 : vector<16x1xf32>
      %c0_23 = arith.constant 0 : index
      %c0_24 = arith.constant 0 : index
      %40 = vector.load %arg5[%c0_23, %c0_24] : memref<1x128xf32, #tpu.memory_space<vmem>>, vector<1x128xf32>
      %41 = vector.broadcast %39 : vector<16x1xf32> to vector<16x128xf32>
      %42 = vector.broadcast %40 : vector<1x128xf32> to vector<16x128xf32>
      %43 = arith.mulf %41, %42 : vector<16x128xf32>
      %44 = arith.mulf %36, %43 : vector<16x128xf32>
      %c0_25 = arith.constant 0 : index
      %c0_26 = arith.constant 0 : index
      %45 = vector.load %arg6[%c0_25, %c0_26] : memref<1x128xf32, #tpu.memory_space<vmem>>, vector<1x128xf32>
      %46 = vector.broadcast %45 : vector<1x128xf32> to vector<16x128xf32>
      %47 = arith.addf %44, %46 : vector<16x128xf32>
      %48 = arith.truncf %47 : vector<16x128xf32> to vector<16x128xbf16>
      %c0_27 = arith.constant 0 : index
      %c0_28 = arith.constant 0 : index
      %49 = vector.load %arg10[%c0_27, %c0_28] : memref<16x128xbf16, #tpu.memory_space<vmem>>, vector<16x128xbf16>
      tpu.vector_store %arg10[%c0_27, %c0_28], %48 {strides = array<i32>} : memref<16x128xbf16, #tpu.memory_space<vmem>>, vector<16x128xbf16>,
    } else {
    }
    %c0 = arith.constant 0 : index
    %c0_1 = arith.constant 0 : index
    %3 = vector.load %arg10[%c0, %c0_1] : memref<16x128xbf16, #tpu.memory_space<vmem>>, vector<16x128xbf16>
    %c0_2 = arith.constant 0 : index
    %c0_3 = arith.constant 0 : index
    %4 = vector.load %arg7[%c0_2, %c0_3] : memref<512x128xbf16, #tpu.memory_space<vmem>>, vector<512x128xbf16>
    %cst = arith.constant dense<0.000000e+00> : vector<16x512xf32>
    %5 = tpu.matmul %3, %4, %cst {dimension_numbers = #tpu.dot_dimension_numbers<[1], [1], [0], [0], [0, 0, 1, 0], [], []>} : vector<16x128xbf16>, vector<512x128xbf16>, vector<16x512xf32> -> vector<16x512xf32>
    %c0_4 = arith.constant 0 : index
    %c0_5 = arith.constant 0 : index
    %6 = vector.load %arg8[%c0_4, %c0_5] : memref<1x512xf32, #tpu.memory_space<vmem>>, vector<1x512xf32>
    %7 = vector.broadcast %6 : vector<1x512xf32> to vector<16x512xf32>
    %8 = arith.addf %5, %7 : vector<16x512xf32>
    %c0_6 = arith.constant 0 : index
    %c0_7 = arith.constant 0 : index
    %9 = vector.load %arg9[%c0_6, %c0_7] : memref<16x512xf32, #tpu.memory_space<vmem>>, vector<16x512xf32>
    tpu.vector_store %arg9[%c0_6, %c0_7], %8 {strides = array<i32>} : memref<16x512xf32, #tpu.memory_space<vmem>>, vector<16x512xf32>,
    return
  }
  func.func @transform_0(%arg0: i32, %arg1: i32) -> (i32, i32) {
    %c0_i32 = arith.constant 0 : i32
    %c0_i32_0 = arith.constant 0 : i32
    return %arg0, %c0_i32 : i32, i32
  }
  func.func @transform_1(%arg0: i32, %arg1: i32) -> (i32, i32) {
    %c0_i32 = arith.constant 0 : i32
    %c0_i32_0 = arith.constant 0 : i32
    %c0_i32_1 = arith.constant 0 : i32
    return %c0_i32, %c0_i32_0 : i32, i32
  }
  func.func @transform_2(%arg0: i32, %arg1: i32) -> (i32, i32) {
    %c0_i32 = arith.constant 0 : i32
    %c0_i32_0 = arith.constant 0 : i32
    %c0_i32_1 = arith.constant 0 : i32
    return %c0_i32, %c0_i32_0 : i32, i32
  }
  func.func @transform_3(%arg0: i32, %arg1: i32) -> (i32, i32) {
    %c0_i32 = arith.constant 0 : i32
    %c0_i32_0 = arith.constant 0 : i32
    %c0_i32_1 = arith.constant 0 : i32
    return %c0_i32, %c0_i32_0 : i32, i32
  }
  func.func @transform_4(%arg0: i32, %arg1: i32) -> (i32, i32) {
    %c0_i32 = arith.constant 0 : i32
    %c0_i32_0 = arith.constant 0 : i32
    %c0_i32_1 = arith.constant 0 : i32
    return %c0_i32, %c0_i32_0 : i32, i32
  }
  func.func @transform_5(%arg0: i32, %arg1: i32) -> (i32, i32) {
    %c0_i32 = arith.constant 0 : i32
    %c0_i32_0 = arith.constant 0 : i32
    return %arg1, %c0_i32 : i32, i32
  }
  func.func @transform_6(%arg0: i32, %arg1: i32) -> (i32, i32) {
    %c0_i32 = arith.constant 0 : i32
    %c0_i32_0 = arith.constant 0 : i32
    return %c0_i32, %arg1 : i32, i32
  }
  func.func @transform_7(%arg0: i32, %arg1: i32) -> (i32, i32) {
    %c0_i32 = arith.constant 0 : i32
    return %arg0, %arg1 : i32, i32
  }
}

</mosaic_0001>

<bundles_post_ra>
// kernel: tpu_custom_call.1
= control target key start
LH: loop header
LB: loop body
LE: loop exit
PB: predicated region body
PF: predicated region fallthrough
CT: control target
= control target key end

     0   :  { %s1986_s0 = inlined_call_operand.hbm [shape: bf16[16,128], index: 0, kind: input, shape index: {}]   ;;  %s1987_s1 = inlined_call_operand.hbm [shape: bf16[128,128], index: 1, kind: input, shape index: {}]   ;;  %s1988_s2 = inlined_call_operand.vmem [shape: f32[1,128], index: 2, kind: input, shape index: {}]   ;;  %s1989_s3 = inlined_call_operand.vmem [shape: f32[1,128], index: 3, kind: input, shape index: {}]   ;;  %s1990_s4 = inlined_call_operand.vmem [shape: f32[1,128], index: 4, kind: input, shape index: {}]   ;;  %s1991_s5 = inlined_call_operand.hbm [shape: bf16[1024,128], index: 5, kind: input, shape index: {}]   ;;  %s1992_s6 = inlined_call_operand.hbm [shape: f32[1,1024], index: 6, kind: input, shape index: {}]   ;;  %s1993_s7 = inlined_call_operand.hbm [shape: f32[16,1024], index: 7, kind: output, shape index: {}]  }
   0x1   :  { %2002 = sst [smem:[#allocation19_spill]] %s1986_s0 }
   0x2   :  { %2003 = sst [smem:[#allocation20_spill]] %s1987_s1 }
   0x3   :  { %2004 = sst [smem:[#allocation21_spill]] %s1991_s5 }
   0x4   :  { %2005 = sst [smem:[#allocation22_spill]] %s1993_s7 }
   0x5   :  { %12 = vsyncpa [#allocation4], 0 }
   0x6   :  { %13 = vsyncpa [#allocation7], 0 }
   0x7   :  { %14 = vsyncpa [#allocation5], 0 }
   0x8   :  { %16 = vsyncpa [#allocation5 + $0x1], 0  ;;  %s1729_s24 = smov 0   ;;  %s1731_s25 = smov 0  }
   0x9   :  { %s1733_s26 = smov 0   ;;  %s1735_s27 = smov 0  }
   0xa   :  { %s1737_s28 = smov 0   ;;  %s1739_s29 = smov 0  }
   0xb LB: > { %2006 = sst [smem:[#allocation15_spill]] %s1659_s24  ;;  %s1760_s30 = sadd.s32 4294967295, %s1679_s29   ;;  %s1679_s29 = sphi %s1739_s29, %s22_s29   ;;  %s1675_s28 = sphi %s1737_s28, %s2031_s28   ;;  %s1671_s27 = sphi %s1735_s27, %s2030_s27   ;;  %s1667_s26 = sphi %s1733_s26, %s2029_s26   ;;  %s1663_s25 = sphi %s1731_s25, %s2028_s25   ;;  %s1659_s24 = sphi %s1729_s24, %s2027_s24  }
   0xc   : > { %s1121_s8 = sadd.s32 4294967294, %s1679_s29   ;;  %p164_p0 = scmp.ne.s32.totalorder %s1663_s25, %s1659_s24 }
   0xd   : > { %p165_p1 = scmp.eq.s32.totalorder %s1760_s30, 0  ;;  %p216_p2 = scmp.eq.s32.totalorder %s1760_s30, 1 }
   0xe   : > { %p222_p3 = scmp.eq.s32.totalorder %s1121_s8, 1  ;;  %p1122_p5 = scmp.ge.s32.totalorder %s1679_s29, 1 }
   0xf   : > { %p1769_p4 = por %p165_p1, %p164_p0  ;;  %p229_p7 = scmp.lt.s32.totalorder %s1679_s29, 3 }
  0x10   : > { %p1774_p6 = por %p222_p3, %p164_p0  ;;  %s2010_s0 = sld [smem:[#allocation19_spill]] }
  0x11   : > { %p1782_p8 = pnand %p1122_p5, %p229_p7  ;;  %s1681_s15 = smov [#allocation3]  }
  0x12   : > { %s2008_s10 = scalar_select %p1774_p6, 1, 0 }
  0x13   : > { %p1376_p9 = pneg %p1782_p8  ;;  %s245_s16 = sshll.u32 %s1681_s15, 4  ;;  %s246_s16 = int_to_ptr.vmem [resolvable:$true] %s245_s16 }
  0x14   : > { %2009 = sst [smem:[#allocation16_spill]] %s2008_s10  ;;  %p1125_p11 = scmp.ge.s32.totalorder %s1679_s29, 2 }
  0x15   : > { %p1790_p10 = pnand %p1376_p9, %p165_p1  ;;  %s1994_s18 = smov 64  }
  0x16   : > { %s243_s13 = sshll.u32 %s2010_s0, 4  ;;  %s1996_s19 = smov 4   ;;  %s244_s13 = int_to_ptr.hbm [resolvable:$true] %s243_s13 }
  0x17   : > { %1379 = dma.hbm_to_vmem [thread:$0]  (!%p1790_p10), %s244_s13, 128, %s246_s16, [#allocation4], %s1994_s18, %s1994_s18, %s1996_s19  }
  0x18   : > { %s31_s20 = sadd.s32 1, %s1675_s28  ;;  %s151_s21 = sadd.s32 1, %s1667_s26 }
  0x19   : > { %p32_p12 = scmp.ge.s32.totalorder %s31_s20, 2  ;;  %p158_p13 = scmp.ne.s32.totalorder %s1667_s26, %s1663_s25 }
  0x1a   : > { %p159_p0 = scmp.eq.s32.totalorder %s1679_s29, 0  ;;  %p1396_p7 = scmp.lt.s32.totalorder %s1679_s29, 2 }
  0x1b   : > { %s2033_s20 = smov (%p32_p12, %s31_s20), 0  ;;  %p1813_p5 = por %p216_p2, %p158_p13 }
  0x1c   : > { %2013 = sst [smem:[#allocation17_spill]] %s2033_s20  ;;  %p1807_p3 = por %p159_p0, %p158_p13 }
  0x1d   : > { %s148_s8 = ssub.s32 %s1675_s28, %s2033_s20  ;;  %s282_s11 = sand.u32 1, %s1679_s29  }
  0x1e   : > { %p149_p9 = scmp.eq.s32.totalorder %s148_s8, 0  ;;  %s284_s12 = sand.u32 1, %s1667_s26  }
  0x1f   : > { %s1126_s15 = sshll.u32 %s284_s12, 8  ;;  %s1313_s16 = sshll.u32 %s1675_s28, 8 }
  0x20   : > { %s1823_s13 = scalar_select %p149_p9, %s1667_s26, %s151_s21  }
  0x21   : > { %s2017_s5 = sld [smem:[#allocation21_spill]]  ;;  %s286_s24 = scalar_lea.vmem [#allocation8], %s1126_s15 }
  0x22   : > { %2016 = sst [smem:[#allocation18_spill]] %s1823_s13  ;;  %s294_s7 = sshll.u32 %s286_s24, 4  ;;  %s295_s7 = int_to_ptr.vmem [resolvable:$true] %s294_s7 }
  0x23   : > { %p1833_p2 = pnand %p1396_p7, %p1807_p3  ;;  %s2019_s1 = sld [smem:[#allocation20_spill]] }
  0x24   : > { %s1684_s18 = smov [#allocation6]   ;;  %s2020_s24 = smov 4  }
  0x25   : > { %s259_s19 = sshll.u32 %s1684_s18, 4  ;;  %s2021_s15 = smov 64   ;;  %s260_s19 = int_to_ptr.vmem [resolvable:$true] %s259_s19 }
  0x26   : > { %s1129_s22 = sshll.u32 %s284_s12, 2  ;;  %s1130_s20 = sshll.u32 %s1675_s28, 2 }
  0x27   : > { %s291_s0 = scalar_lea.hbm %s2017_s5, %s1313_s16  ;;  %s308_s5 = scalar_lea.vmem [#allocation9], %s1129_s22 }
  0x28   : > { %s292_s10 = sshll.u32 %s291_s0, 4  ;;  %s283_s0 = scalar_lea.sflag [#allocation4], %s282_s11  ;;  %s293_s10 = int_to_ptr.hbm [resolvable:$true] %s292_s10 }
  0x29   : > { %s257_s13 = sshll.u32 %s2019_s1, 4  ;;  %s312_s1 = scalar_lea.hbm %s1992_s6, %s1130_s20  ;;  %s258_s13 = int_to_ptr.hbm [resolvable:$true] %s257_s13 }
  0x2a   : > { %1386 = dma.hbm_to_vmem [thread:$0]  (!%p1833_p2), %s293_s10, 4096, %s295_s7, %s283_s0, %s2021_s15, %s2021_s15, %s2020_s24  }
  0x2b   : > { %1382 = dma.hbm_to_vmem [thread:$0]  (!%p1790_p10), %s258_s13, 1024, %s260_s19, [#allocation7], %s2021_s15, %s2021_s15, %s2020_s24  }
  0x2c   : > { %s316_s18 = sshll.u32 %s308_s5, 4  ;;  %s314_s11 = sshll.u32 %s312_s1, 4  ;;  %s317_s18 = int_to_ptr.vmem [resolvable:$true] %s316_s18  ;;  %s315_s11 = int_to_ptr.hbm [resolvable:$true] %s314_s11 }
  0x2d   : > { %1389 = dma.hbm_to_vmem [thread:$0]  (!%p1833_p2), %s315_s11, 64, %s317_s18, %s283_s0  }
  0x2e   : > { %325 = sbr.rel (%p1782_p8) target bundleno = 801 (0x321), region = 48 }
  0x33   : > { %1642 = dma.done.wait (%p165_p1), [#allocation4], 128  }
  0x34   : > { %1644 = vsyncadd (%p165_p1), [#allocation4], 4294967168 }
  0x35   : > { %1646 = dma.done.wait (%p165_p1), [#allocation7], 1024  }
  0x36   : > { %1648 = vsyncadd (%p165_p1), [#allocation7], 4294966272  ;;  %s337_s1 = sand.u32 1, %s1760_s30   ;;  %s1868_s5 = sand.u32 1, %s1663_s25  }
  0x37   : > { %s1134_s7 = sshll.u32 %s1868_s5, 8  ;;  %s338_s10 = scalar_lea.sflag [#allocation4], %s337_s1 }
  0x38   : > { %s1871_s14 = scalar_lea.vmem [#allocation8], %s1134_s7 }
  0x39   : > { %1650 = dma.done.wait (%p1769_p4), %s338_s10, 4160  }
  0x3a   : > { %1652 = vsyncadd (%p1769_p4), %s338_s10, 4294963136  ;;  %s1135_s17 = sshll.u32 %s1868_s5, 2  ;;  %s1136_s12 = sshll.u32 %s1868_s5, 6 }
  0x3b   : > { %s1879_s13 = scalar_lea.vmem [#allocation9], %s1135_s17  ;;  %s1881_s8 = scalar_lea.vmem [#allocation10], %s1136_s12 }
  0x3c   : > { %p1137_p1 = scmp.ne.s32.totalorder %s1671_s27, 0 }
  0x3e   : > { %396 = sbr.rel (%p1137_p1) target bundleno = 587 (0x24b), region = 68 }
  0x43   : > { %v1322_v0 = vld [vmem:[#allocation6 + $0x38] sm:$0xff]  ;;  %v1321_v1 = vld [vmem:[#allocation6 + $0x30] sm:$0xff]  ;;  %v1320_v2 = vld [vmem:[#allocation6 + $0x28] sm:$0xff] }
  0x44   : > { %473 = vmatpush.bf16.xpose.msra.mxu0 %v1322_v0  ;;  %v1319_v3 = vld [vmem:[#allocation6 + $0x20] sm:$0xff]  ;;  %v1318_v4 = vld [vmem:[#allocation6 + $0x18] sm:$0xff]  ;;  %v1317_v5 = vld [vmem:[#allocation6 + $0x10] sm:$0xff] }
  0x45   : > { %v1316_v6 = vld [vmem:[#allocation6 + $0x8] sm:$0xff]  ;;  %v1315_v7 = vld [vmem:[#allocation6] sm:$0xff]  ;;  %v1314_v8 = vld [vmem:[#allocation3] sm:$0xff] }
  0x46   : > { %v1456_v9 = vld [vmem:[%s1988_s2] ss:$0 sm:$0xff] }
  0x4c   : > { %474 = vmatpush.bf16.xpose.msra.mxu0 %v1321_v1 }
  0x54   : > { %475 = vmatpush.bf16.xpose.msra.mxu0 %v1320_v2 }
  0x5c   : > { %476 = vmatpush.bf16.xpose.msra.mxu0 %v1319_v3 }
  0x64   : > { %477 = vmatpush.bf16.xpose.msra.mxu0 %v1318_v4 }
  0x6c   : > { %478 = vmatpush.bf16.xpose.msra.mxu0 %v1317_v5 }
  0x74   : > { %479 = vmatpush.bf16.xpose.msra.mxu0 %v1316_v6 }
  0x7c   : > { %480 = vmatpush.bf16.xpose.msra.mxu0 %v1315_v7 }
  0x83   : > { %481 = vmatmul.bf16.vlgmr.msra.gmra.mxu0 %v1314_v8 }
 0x100   : > { %v482_v10 = vpop.f32.mrf.mxu0 }
 0x101   : > { %v1887_v11 = vadd.f32 %v1456_v9, %v482_v10 }
 0x103   : > { %v489_v12 = vmul.f32 0.70710677, %v1887_v11 }
 0x105   : > { %v491_v13 = vmul.f32 %v489_v12, %v489_v12 }
 0x107   : > { %v492_v14 = vmin.f32 %v491_v13, 16.0 }
 0x108   : > { %v484_v15 = vpop.f32.mrf.mxu0 }
 0x109   : > { %v493_v16 = vmul.f32 2.1237322e-06, %v492_v14  ;;  %v1890_v17 = vadd.f32 %v1456_v9, %v484_v15  ;;  %v504_v18 = vmul.f32 3.8918573e-05, %v492_v14 }
 0x10b   : > { %v494_v19 = vadd.f32 0.00028619796, %v493_v16  ;;  %v1893_v20 = vmul.f32 0.70710677, %v1890_v17  ;;  %v505_v21 = vadd.f32 0.001143296, %v504_v18 }
 0x10d   : > { %v495_v22 = vmul.f32 %v494_v19, %v492_v14  ;;  %v531_v23 = vmul.f32 %v1893_v20, %v1893_v20  ;;  %v506_v24 = vmul.f32 %v505_v21, %v492_v14  ;;  %v487_v19 = vmul.f32 0.5, %v1887_v11 }
 0x10f   : > { %v532_v25 = vmin.f32 %v531_v23, 16.0  ;;  %v507_v26 = vadd.f32 0.014752088, %v506_v24  ;;  %v496_v27 = vadd.f32 0.0036580483, %v495_v22 }
 0x111   : > { %v533_v28 = vmul.f32 2.1237322e-06, %v532_v25  ;;  %v544_v29 = vmul.f32 3.8918573e-05, %v532_v25  ;;  %v508_v30 = vmul.f32 %v507_v26, %v492_v14  ;;  %v497_v34 = vmul.f32 %v496_v27, %v492_v14 }
 0x113   : > { %v534_v31 = vadd.f32 0.00028619796, %v533_v28  ;;  %v545_v32 = vadd.f32 0.001143296, %v544_v29  ;;  %v509_v33 = vadd.f32 0.112945676, %v508_v30 }
 0x114   : > { %v498_v41 = vadd.f32 0.05243302, %v497_v34  ;;  %v488_v28 = vmul.f32 0.5, %v1890_v17 }
 0x115   : > { %v535_v35 = vmul.f32 %v534_v31, %v532_v25  ;;  %v546_v36 = vmul.f32 %v545_v32, %v532_v25  ;;  %v510_v37 = vmul.f32 %v509_v33, %v492_v14  ;;  %v1685_v31 = vmov 128.0  }
 0x116   : > { %v499_v47 = vmul.f32 %v498_v41, %v492_v14 }
 0x117   : > { %v547_v38 = vadd.f32 0.014752088, %v546_v36  ;;  %v536_v39 = vadd.f32 0.0036580483, %v535_v35  ;;  %v511_v40 = vadd.f32 0.4994258, %v510_v37 }
 0x118   : > { %v500_v51 = vadd.f32 0.18741608, %v499_v47 }
 0x119   : > { %v548_v42 = vmul.f32 %v547_v38, %v532_v25  ;;  %v512_v43 = vmul.f32 %v511_v40, %v492_v14  ;;  %v537_v45 = vmul.f32 %v536_v39, %v532_v25 }
 0x11a   : > { %v501_v56 = vmul.f32 %v500_v51, %v492_v14 }
 0x11b   : > { %v549_v44 = vadd.f32 0.112945676, %v548_v42  ;;  %v513_v46 = vadd.f32 1.0, %v512_v43  ;;  %v538_v50 = vadd.f32 0.05243302, %v537_v45 }
 0x11c   : > { %v502_v61 = vadd.f32 1.1283791, %v501_v56 }
 0x11d   : > { %v550_v48 = vmul.f32 %v549_v44, %v532_v25  ;;  %1459 = vrcp.f32 %v513_v46  ;;  %v539_v55 = vmul.f32 %v538_v50, %v532_v25  ;;  %v525_v60 = vand.u32 2147483648, %v513_v46 }
 0x11e   : > { %v523_v63 = vand.u32 2147483647, %v513_v46  ;;  %vm519_vm1 = vweird.f32 %v513_v46  ;;  %v503_v5 = vmul.f32 %v502_v61, %v489_v12 }
 0x11f   : > { %v551_v49 = vadd.f32 0.4994258, %v550_v48  ;;  %v540_v59 = vadd.f32 0.18741608, %v539_v55  ;;  %v526_v3 = vor.u32 1.1754944e-38, %v525_v60 }
 0x120   : > { %vm524_vm3 = vcmp.eq.f32.partialorder %v523_v63, 8.507059e+37 }
 0x121   : > { %v552_v52 = vmul.f32 %v551_v49, %v532_v25  ;;  %v541_v2 = vmul.f32 %v540_v59, %v532_v25 }
 0x123   : > { %v553_v53 = vadd.f32 1.0, %v552_v52  ;;  %v1460_v54 = vpop.eup %1459  ;;  %v542_v13 = vadd.f32 1.1283791, %v541_v2 }
 0x124   : > { %v515_v57 = vmul.f32 %v1460_v54, %v513_v46  ;;  %vm520_vm0 = vweird.f32 %v1460_v54 }
 0x125   : > { %1461 = vrcp.f32 %v553_v53  ;;  %vm521_vm2 = vmor %vm519_vm1, %vm520_vm0  ;;  %v565_v10 = vand.u32 2147483648, %v553_v53  ;;  %v563_v15 = vand.u32 2147483647, %v553_v53  ;;  %vm559_vm5 = vweird.f32 %v553_v53 }
 0x126   : > { %v516_v58 = vsub.f32 1.0, %v515_v57  ;;  %v543_v12 = vmul.f32 %v542_v13, %v1893_v20  ;;  %1463 = vrcp.f32 %v1685_v31 }
 0x127   : > { %v566_v22 = vor.u32 1.1754944e-38, %v565_v10  ;;  %vm564_vm7 = vcmp.eq.f32.partialorder %v563_v15, 8.507059e+37 }
 0x128   : > { %v517_v62 = vmul.f32 %v1460_v54, %v516_v58  ;;  %v1457_v58 = vld [vmem:[%s1989_s3] ss:$0 sm:$0xff] }
 0x12a   : > { %v518_v1 = vadd.f32 %v1460_v54, %v517_v62 }
 0x12b   : > { %v1462_v0 = vpop.eup %1461 }
 0x12c   : > { %v555_v4 = vmul.f32 %v1462_v0, %v553_v53  ;;  %v522_v6 = vsel %vm521_vm2, %v1460_v54, %v518_v1  ;;  %vm560_vm4 = vweird.f32 %v1462_v0  ;;  %v1464_v11 = vpop.eup %1463  ;;  %v1458_v1 = vld [vmem:[%s1990_s4] ss:$0 sm:$0xff] }
 0x12d   : > { %v527_v7 = vsel %vm524_vm3, %v526_v3, %v522_v6  ;;  %vm561_vm6 = vmor %vm559_vm5, %vm560_vm4  ;;  %v580_v32 = vmul.f32 128.0, %v1464_v11  ;;  %vm584_vm8 = vweird.f32 %v1464_v11 }
 0x12e   : > { %v556_v8 = vsub.f32 1.0, %v555_v4  ;;  %v528_v9 = vmul.f32 %v527_v7, %v503_v5 }
 0x12f   : > { %v581_v33 = vsub.f32 1.0, %v580_v32 }
 0x130   : > { %v557_v14 = vmul.f32 %v1462_v0, %v556_v8  ;;  %v1174_v16 = vclamps-f32 %v528_v9, 1.0 }
 0x131   : > { %v582_v34 = vmul.f32 %v1464_v11, %v581_v33 }
 0x132   : > { %v558_v18 = vadd.f32 %v1462_v0, %v557_v14  ;;  %v571_v21 = vadd.f32 1.0, %v1174_v16 }
 0x133   : > { %v583_v35 = vadd.f32 %v1464_v11, %v582_v34 }
 0x134   : > { %v562_v23 = vsel %vm561_vm6, %v1462_v0, %v558_v18  ;;  %v573_v24 = vmul.f32 %v571_v21, %v487_v19 }
 0x135   : > { %v567_v25 = vsel %vm564_vm7, %v566_v22, %v562_v23  ;;  %v585_v20 = vsel %vm584_vm8, %v1464_v11, %v583_v35 }
 0x136   : > { %v568_v26 = vmul.f32 %v567_v25, %v543_v12  ;;  %575 = vadd.xlane.f32.xlu0 %v573_v24 }
 0x138   : > { %v1175_v27 = vclamps-f32 %v568_v26, 1.0 }
 0x13a   : > { %v572_v29 = vadd.f32 1.0, %v1175_v27 }
 0x13c   : > { %v574_v30 = vmul.f32 %v572_v29, %v488_v28 }
 0x13e   : > { %577 = vadd.xlane.f32.xlu0 %v574_v30 }
 0x1a9   : > { %v576_v36 = vpop.xlane.xlu0 %575 }
 0x1aa   : > { %v586_v37 = vmul.f32 %v585_v20, %v576_v36 }
 0x1ac   : > { %v588_v38 = vsub.f32 %v573_v24, %v586_v37 }
 0x1ae   : > { %v590_v39 = vmul.f32 %v588_v38, %v588_v38 }
 0x1b0   : > { %592 = vadd.xlane.f32.xlu1 %v590_v39 }
 0x1b1   : > { %v578_v40 = vpop.xlane.xlu0 %577 }
 0x1b2   : > { %v587_v41 = vmul.f32 %v585_v20, %v578_v40 }
 0x1b4   : > { %v589_v17 = vsub.f32 %v574_v30, %v587_v41 }
 0x1b6   : > { %v591_v42 = vmul.f32 %v589_v17, %v589_v17 }
 0x1b8   : > { %594 = vadd.xlane.f32.xlu1 %v591_v42 }
 0x223   : > { %v593_v43 = vpop.xlane.xlu1 %592 }
 0x224   : > { %v596_v44 = vmul.f32 %v593_v43, %v585_v20 }
 0x226   : > { %v598_v45 = vadd.f32 1e-12, %v596_v44 }
 0x228   : > { %1465 = vrsqrt.f32 %v598_v45  ;;  %vm606_vm10 = vweird.f32 %v598_v45 }
 0x22b   : > { %v595_v46 = vpop.xlane.xlu1 %594 }
 0x22c   : > { %v597_v47 = vmul.f32 %v595_v46, %v585_v20 }
 0x22e   : > { %v1466_v48 = vpop.eup %1465  ;;  %v599_v49 = vadd.f32 1e-12, %v597_v47 }
 0x22f   : > { %v601_v50 = vmul.f32 %v1466_v48, %v598_v45  ;;  %vm607_vm9 = vweird.f32 %v1466_v48 }
 0x230   : > { %1467 = vrsqrt.f32 %v599_v49  ;;  %vm608_vm11 = vmor %vm606_vm10, %vm607_vm9  ;;  %vm616_vm13 = vweird.f32 %v599_v49 }
 0x231   : > { %v602_v51 = vmul.f32 %v1466_v48, %v601_v50 }
 0x233   : > { %v603_v52 = vmul.f32 0.5, %v602_v51 }
 0x235   : > { %v604_v53 = vsub.f32 1.5, %v603_v52 }
 0x236   : > { %v1468_v54 = vpop.eup %1467 }
 0x237   : > { %v605_v55 = vmul.f32 %v1466_v48, %v604_v53  ;;  %v611_v56 = vmul.f32 %v1468_v54, %v599_v49  ;;  %vm617_vm12 = vweird.f32 %v1468_v54 }
 0x238   : > { %vm618_vm14 = vmor %vm616_vm13, %vm617_vm12 }
 0x239   : > { %v612_v57 = vmul.f32 %v1468_v54, %v611_v56  ;;  %v609_v59 = vsel %vm608_vm11, %v1466_v48, %v605_v55 }
 0x23a   : > { %v624_v62 = vmul.f32 %v1457_v58, %v609_v59 }
 0x23b   : > { %v613_v60 = vmul.f32 0.5, %v612_v57 }
 0x23c   : > { %v626_v2 = vmul.f32 %v624_v62, %v588_v38 }
 0x23d   : > { %v614_v61 = vsub.f32 1.5, %v613_v60 }
 0x23e   : > { %v632_v5 = vadd.f32 %v1458_v1, %v626_v2 }
 0x23f   : > { %v615_v63 = vmul.f32 %v1468_v54, %v614_v61 }
 0x241   : > { %v619_v0 = vsel %vm618_vm14, %v1468_v54, %v615_v63 }
 0x242   : > { %v625_v3 = vmul.f32 %v1457_v58, %v619_v0 }
 0x244   : > { %v627_v4 = vmul.f32 %v625_v3, %v589_v17 }
 0x246   : > { %v633_v6 = vadd.f32 %v1458_v1, %v627_v4 }
 0x248   : > { %v1360_v7 = vpack.c.bf16 %v633_v6, %v632_v5 }
 0x24a   : > { %1361 = vst [vmem:[#allocation2] sm:$0xff] %v1360_v7  }
 0x24b PF: > { %v1331_v8 = vld [vmem:[%s1871_s14 + $0x38] sm:$0xff]  ;;  %v1330_v14 = vld [vmem:[%s1871_s14 + $0x30] sm:$0xff]  ;;  %v1329_v19 = vld [vmem:[%s1871_s14 + $0x28] sm:$0xff]  ;;  %s1356_s22 = sshll.u32 %s1671_s27, 5  ;;  %s2022_s21 = sld [smem:[#allocation22_spill]] }
 0x24c   : > { %v1339_v9 = vld [vmem:[%s1871_s14 + $0x78] sm:$0xff]  ;;  %912 = vmatpush.bf16.xpose.msra.mxu0 %v1331_v8  ;;  %v1338_v15 = vld [vmem:[%s1871_s14 + $0x70] sm:$0xff]  ;;  %v1337_v21 = vld [vmem:[%s1871_s14 + $0x68] sm:$0xff]  ;;  %s992_s11 = sshll.u32 %s1881_s8, 4  ;;  %s977_s1 = scalar_lea.sflag [#allocation5], %s1868_s5  ;;  %s993_s11 = int_to_ptr.vmem [resolvable:$true] %s992_s11 }
 0x24d   : > { %v1347_v10 = vld [vmem:[%s1871_s14 + $0xb8] sm:$0xff]  ;;  %926 = vmatpush.bf16.xpose.msra.mxu1 %v1339_v9  ;;  %v1346_v16 = vld [vmem:[%s1871_s14 + $0xb0] sm:$0xff]  ;;  %v1345_v22 = vld [vmem:[%s1871_s14 + $0xa8] sm:$0xff] }
 0x24e   : > { %v1355_v13 = vld [vmem:[%s1871_s14 + $0xf8] sm:$0xff]  ;;  %940 = vmatpush.bf16.xpose.msra.mxu2 %v1347_v10  ;;  %v1354_v18 = vld [vmem:[%s1871_s14 + $0xf0] sm:$0xff]  ;;  %v1353_v12 = vld [vmem:[%s1871_s14 + $0xe8] sm:$0xff] }
 0x24f   : > { %954 = vmatpush.bf16.xpose.msra.mxu3 %v1355_v13  ;;  %v1328_v23 = vld [vmem:[%s1871_s14 + $0x20] sm:$0xff]  ;;  %v1327_v27 = vld [vmem:[%s1871_s14 + $0x18] sm:$0xff]  ;;  %v1326_v31 = vld [vmem:[%s1871_s14 + $0x10] sm:$0xff] }
 0x250   : > { %v1336_v24 = vld [vmem:[%s1871_s14 + $0x60] sm:$0xff]  ;;  %v1335_v28 = vld [vmem:[%s1871_s14 + $0x58] sm:$0xff]  ;;  %v1334_v11 = vld [vmem:[%s1871_s14 + $0x50] sm:$0xff] }
 0x251   : > { %v1344_v25 = vld [vmem:[%s1871_s14 + $0xa0] sm:$0xff]  ;;  %v1343_v29 = vld [vmem:[%s1871_s14 + $0x98] sm:$0xff]  ;;  %v1342_v32 = vld [vmem:[%s1871_s14 + $0x90] sm:$0xff]  ;;  %s991_s18 = scalar_lea.hbm %s2022_s21, %s1356_s22  ;;  %s1609_s12 = scalar_lea.hbm %s2022_s21, 128 }
 0x252   : > { %v1352_v26 = vld [vmem:[%s1871_s14 + $0xe0] sm:$0xff]  ;;  %v1351_v30 = vld [vmem:[%s1871_s14 + $0xd8] sm:$0xff]  ;;  %v1350_v33 = vld [vmem:[%s1871_s14 + $0xd0] sm:$0xff]  ;;  %s994_s27 = sshll.u32 %s991_s18, 4  ;;  %s995_s27 = int_to_ptr.hbm [resolvable:$true] %s994_s27 }
 0x253   : > { %v1325_v34 = vld [vmem:[%s1871_s14 + $0x8] sm:$0xff]  ;;  %v1324_v37 = vld [vmem:[%s1871_s14] sm:$0xff]  ;;  %v1323_v41 = vld [vmem:[#allocation2] sm:$0xff]  ;;  %s1603_s7 = sshra.s32 %s995_s27, 4  ;;  %s1604_s7 = int_to_ptr.hbm [resolvable:$true] %s1603_s7 }
 0x254   : > { %913 = vmatpush.bf16.xpose.msra.mxu0 %v1330_v14  ;;  %v1333_v35 = vld [vmem:[%s1871_s14 + $0x48] sm:$0xff]  ;;  %v1332_v38 = vld [vmem:[%s1871_s14 + $0x40] sm:$0xff]  ;;  %s1605_s10 = scalar_lea.hbm %s1604_s7, 64  ;;  %p1610_p12 = scmp.lt.s32.totalorder %s1604_s7, %s2022_s21 }
 0x255   : > { %927 = vmatpush.bf16.xpose.msra.mxu1 %v1338_v15  ;;  %v1341_v20 = vld [vmem:[%s1871_s14 + $0x88] sm:$0xff]  ;;  %v1340_v39 = vld [vmem:[%s1871_s14 + $0x80] sm:$0xff]  ;;  %p1606_p4 = scmp.ne.s32.totalorder %s1604_s7, %s1605_s10  ;;  %p1611_p13 = scmp.lt.s32.totalorder %s1609_s12, %s1605_s10 }
 0x256   : > { %941 = vmatpush.bf16.xpose.msra.mxu2 %v1346_v16  ;;  %v1349_v36 = vld [vmem:[%s1871_s14 + $0xc8] sm:$0xff]  ;;  %v1348_v40 = vld [vmem:[%s1871_s14 + $0xc0] sm:$0xff] }
 0x257   : > { %955 = vmatpush.bf16.xpose.msra.mxu3 %v1354_v18  ;;  %v704_v17 = vld [vmem:[%s1879_s13] sm:$0xf]  ;;  %p1607_p8 = pnand %p1606_p4, %p1813_p5  ;;  %p1612_p0 = por %p1611_p13, %p1610_p12 }
 0x258   : > { %v706_v42 = vperm.slane %v704_v17, 0  ;;  %v707_v43 = vperm.slane %v704_v17, 1  ;;  %v708_v48 = vperm.slane %v704_v17, 2  ;;  %v709_v49 = vperm.slane %v704_v17, 3 }
 0x259   : > { %p1608_p10 = pneg %p1607_p8 }
 0x25b   : > { %p1613_p3 = pnand %p1612_p0, %p1608_p10 }
 0x25c   : > { %914 = vmatpush.bf16.xpose.msra.mxu0 %v1329_v19 }
 0x25d   : > { %928 = vmatpush.bf16.xpose.msra.mxu1 %v1337_v21 }
 0x25e   : > { %942 = vmatpush.bf16.xpose.msra.mxu2 %v1345_v22 }
 0x25f   : > { %956 = vmatpush.bf16.xpose.msra.mxu3 %v1353_v12 }
 0x264   : > { %915 = vmatpush.bf16.xpose.msra.mxu0 %v1328_v23 }
 0x265   : > { %929 = vmatpush.bf16.xpose.msra.mxu1 %v1336_v24 }
 0x266   : > { %943 = vmatpush.bf16.xpose.msra.mxu2 %v1344_v25 }
 0x267   : > { %957 = vmatpush.bf16.xpose.msra.mxu3 %v1352_v26 }
 0x26c   : > { %916 = vmatpush.bf16.xpose.msra.mxu0 %v1327_v27 }
 0x26d   : > { %930 = vmatpush.bf16.xpose.msra.mxu1 %v1335_v28 }
 0x26e   : > { %944 = vmatpush.bf16.xpose.msra.mxu2 %v1343_v29 }
 0x26f   : > { %958 = vmatpush.bf16.xpose.msra.mxu3 %v1351_v30 }
 0x274   : > { %917 = vmatpush.bf16.xpose.msra.mxu0 %v1326_v31 }
 0x275   : > { %931 = vmatpush.bf16.xpose.msra.mxu1 %v1334_v11 }
 0x276   : > { %945 = vmatpush.bf16.xpose.msra.mxu2 %v1342_v32 }
 0x277   : > { %959 = vmatpush.bf16.xpose.msra.mxu3 %v1350_v33 }
 0x27c   : > { %918 = vmatpush.bf16.xpose.msra.mxu0 %v1325_v34 }
 0x27d   : > { %932 = vmatpush.bf16.xpose.msra.mxu1 %v1333_v35 }
 0x27e   : > { %946 = vmatpush.bf16.xpose.msra.mxu2 %v1341_v20 }
 0x27f   : > { %960 = vmatpush.bf16.xpose.msra.mxu3 %v1349_v36 }
 0x284   : > { %919 = vmatpush.bf16.xpose.msra.mxu0 %v1324_v37 }
 0x285   : > { %933 = vmatpush.bf16.xpose.msra.mxu1 %v1332_v38 }
 0x286   : > { %947 = vmatpush.bf16.xpose.msra.mxu2 %v1340_v39 }
 0x287   : > { %961 = vmatpush.bf16.xpose.msra.mxu3 %v1348_v40 }
 0x28b   : > { %920 = vmatmul.bf16.vlgmr.msra.gmra.mxu0 %v1323_v41 }
 0x28c   : > { %934 = vmatmul.bf16.vlgmr.msra.gmra.mxu1 %v1323_v41 }
 0x28d   : > { %948 = vmatmul.bf16.vlgmr.msra.gmra.mxu2 %v1323_v41 }
 0x28e   : > { %962 = vmatmul.bf16.vlgmr.msra.gmra.mxu3 %v1323_v41 }
 0x308   : > { %v921_v44 = vpop.f32.mrf.mxu0 }
 0x309   : > { %v935_v45 = vpop.f32.mrf.mxu1  ;;  %v922_v46 = vadd.f32 %v921_v44, %v706_v42 }
 0x30a   : > { %v936_v47 = vadd.f32 %v935_v45, %v707_v43 }
 0x30b   : > { %968 = vst [vmem:[%s1881_s8] sm:$0xff] %v922_v46 }
 0x30c   : > { %969 = vst [vmem:[%s1881_s8 + $0x8] sm:$0xff] %v936_v47 }
 0x310   : > { %v949_v50 = vpop.f32.mrf.mxu2  ;;  %v923_v54 = vpop.f32.mrf.mxu0 }
 0x311   : > { %v963_v51 = vpop.f32.mrf.mxu3  ;;  %v950_v52 = vadd.f32 %v949_v50, %v708_v48  ;;  %v937_v55 = vpop.f32.mrf.mxu1  ;;  %v924_v56 = vadd.f32 %v923_v54, %v706_v42 }
 0x312   : > { %v964_v53 = vadd.f32 %v963_v51, %v709_v49  ;;  %v938_v57 = vadd.f32 %v937_v55, %v707_v43 }
 0x313   : > { %970 = vst [vmem:[%s1881_s8 + $0x10] sm:$0xff] %v950_v52 }
 0x314   : > { %971 = vst [vmem:[%s1881_s8 + $0x18] sm:$0xff] %v964_v53 }
 0x315   : > { %972 = vst [vmem:[%s1881_s8 + $0x20] sm:$0xff] %v924_v56 }
 0x316   : > { %973 = vst [vmem:[%s1881_s8 + $0x28] sm:$0xff] %v938_v57 }
 0x318   : > { %v951_v58 = vpop.f32.mrf.mxu2 }
 0x319   : > { %v965_v59 = vpop.f32.mrf.mxu3  ;;  %v952_v60 = vadd.f32 %v951_v58, %v708_v48 }
 0x31a   : > { %v966_v61 = vadd.f32 %v965_v59, %v709_v49 }
 0x31b   : > { %974 = vst [vmem:[%s1881_s8 + $0x30] sm:$0xff] %v952_v60 }
 0x31c   : > { %975 = vst [vmem:[%s1881_s8 + $0x38] sm:$0xff] %v966_v61 }
 0x31d   : > { %1616 = shalt.err (!%p1613_p3)
}
 0x31e   : > { %s1686_s5 = smov 512   ;;  %s1687_s8 = smov 1024  }
 0x31f   : > { %s1688_s9 = smov 32  }
 0x320   : > { %1374 = dma.vmem_to_hbm [thread:$0]  (%p1813_p5), %s993_s11, 1024, %s995_s27, %s977_s1, %s1686_s5, %s1687_s8, %s1688_s9  }
 0x321 PF: > { %s2023_s19 = sld [smem:[#allocation15_spill]]  ;;  %p1391_p7 = pnand %p1125_p11, %p1774_p6 }
 0x323   : > { %p1392_p9 = pneg %p1391_p7 }
 0x327   : > { %s1009_s24 = sand.u32 1, %s2023_s19  }
 0x328   : > { %s1010_s15 = scalar_lea.sflag [#allocation5], %s1009_s24 }
 0x329   : > { %1654 = dma.done.wait (%p1392_p9), %s1010_s15, 1024  }
 0x32a   : > { %1656 = vsyncadd (%p1392_p9), %s1010_s15, 4294966272  ;;  %s22_s29 = sadd.s32 1, %s1679_s29   ;;  %s2025_s22 = sld [smem:[#allocation18_spill]] }
 0x32b   : > { %p19_p2 = scmp.ge.s32.totalorder %s22_s29, 4   ;;  %s2026_s23 = sld [smem:[#allocation17_spill]] }
 0x32c   : > { %s2027_s24 = smov %s1663_s25  ;;  %s2028_s25 = smov %s1667_s26 }
 0x32d   : > { %s2030_s27 = smov %s1675_s28  ;;  %21 = sbr.rel (!%p19_p2) target bundleno = 11 (0xb), region = 116 }
 0x330   : > { %s2029_s26 = smov %s2025_s22 }
 0x331   : > { %s2031_s28 = smov %s2026_s23 }
 0x332   :  { %1016 = vsyncpa [#allocation4], 1 }
 0x333   :  { %1018 = vsyncpa [#allocation4 + $0x1], 1 }
 0x334   :  { %1019 = vsyncpa [#allocation7], 1 }
 0x335   :  { %1020 = vsyncpa [#allocation5], 1 }
 0x336   :  { %1022 = vsyncpa [#allocation5 + $0x1], 1 }

</bundles_post_ra>
